<compile_context>
chip_gen: v7x
topology: tpu7x:2x2x1
jax: 0.10.0
libtpu: 0.0.40
codegen_flags: <defaults>
</compile_context>

<pallas_src>
import math
import jax
import jax.numpy as jnp
from jax.experimental import pallas as pl
from jax.experimental.pallas import tpu as pltpu


# ----------------------------- Pallas kernel --------------------------------
def _spectral_moe_kernel(x_ref, w_ref, o_ref):
    """x_ref, w_ref: (Cin, 2, B*Cout, S*P) f32 in VMEM; o_ref: (2, B*Cout, S*P) f32.

    Per lane position p (a flattened (slot, kx, ky) frequency) and per (b, o) row:
        out[p] = sum_i x[i, p] * w[i, p]        (split-complex multiply-accumulate)
    Gates are already folded into w.  Everything is a dense (8, 512) vreg slab.
    """
    cin = x_ref.shape[0]
    acc_r = jnp.zeros(o_ref.shape[1:], jnp.float32)
    acc_i = jnp.zeros(o_ref.shape[1:], jnp.float32)
    # Cin is tiny (4) -> full static unroll keeps everything in vregs.
    # TODO(synk): for Cin > ~16 switch to lax.fori_loop(..., unroll=True) over chunks
    # to bound vreg live ranges / compile time.
    for i in range(cin):
        ar = x_ref[i, 0]
        ai = x_ref[i, 1]
        br = w_ref[i, 0]
        bi = w_ref[i, 1]
        acc_r = acc_r + ar * br - ai * bi
        acc_i = acc_i + ar * bi + ai * br
    o_ref[0] = acc_r
    o_ref[1] = acc_i


def compl_mul_tiles_pallas(x_tiles, w_tiles):
    """x_tiles: (B, Cin, S, m1, m2) c64,  w_tiles: (S, Cin, Cout, m1, m2) c64
       (gates already folded into w_tiles).
       Returns (B, Cout, S, m1, m2) c64 = per-slot einsum('bixy,ioxy->boxy')."""
    B, Cin, S, m1, m2 = x_tiles.shape
    Cout = w_tiles.shape[2]
    SP = S * m1 * m2          # lane axis (multiple of 128 for the default config)
    BC = B * Cout             # sublane axis

    # lane-dense packing: (Cin, 2(re/im), B*Cout, S*P)
    xf = jnp.transpose(x_tiles, (1, 0, 2, 3, 4)).reshape(Cin, B, SP)
    wf = jnp.transpose(w_tiles, (1, 2, 0, 3, 4)).reshape(Cin, Cout, SP)

    xr = jnp.broadcast_to(jnp.real(xf)[:, :, None, :], (Cin, B, Cout, SP))
    xi = jnp.broadcast_to(jnp.imag(xf)[:, :, None, :], (Cin, B, Cout, SP))
    wr = jnp.broadcast_to(jnp.real(wf)[:, None, :, :], (Cin, B, Cout, SP))
    wi = jnp.broadcast_to(jnp.imag(wf)[:, None, :, :], (Cin, B, Cout, SP))

    X = jnp.stack([xr.reshape(Cin, BC, SP),
                   xi.reshape(Cin, BC, SP)], axis=1).astype(jnp.float32)
    W = jnp.stack([wr.reshape(Cin, BC, SP),
                   wi.reshape(Cin, BC, SP)], axis=1).astype(jnp.float32)

    vmem = pl.BlockSpec(memory_space=pltpu.MemorySpace.VMEM)  # whole array, resident
    out = pl.pallas_call(
        _spectral_moe_kernel,
        out_shape=jax.ShapeDtypeStruct((2, BC, SP), jnp.float32),
        in_specs=[vmem, vmem],
        out_specs=vmem,
    )(X, W)

    out_c = (out[0] + 1j * out[1]).astype(jnp.complex64)      # (BC, SP)
    return out_c.reshape(B, Cout, S, m1, m2)


# ------------------------------- module glue ---------------------------------
def _expert_grid_indices(num_experts, ers):
    """(row_block, col_block) of each expert's first-half region."""
    return [(int((e + 1) // ers), int((e + 1) % ers)) for e in range(num_experts)]


def _build_tile_weights(params, cfg):
    """Gate-folded per-tile weights in slot order
       slot = half * ers^2 + row_block * ers + col_block.  Returns (w_tiles, sploss)."""
    E = cfg["num_experts"]
    scaling, temp = cfg["scaling"], cfg["temperature"]
    ers = int(math.sqrt(E + 1))

    # LoRA weights: scaling * sum_r a[r,i] * b[o,r,x,y]  -> (E, Cin, Cout, m1, m2)
    lw1 = scaling * jnp.einsum("eri,eorxy->eioxy", params["lora_a1"], params["lora_b1"])
    lw2 = scaling * jnp.einsum("eri,eorxy->eioxy", params["lora_a2"], params["lora_b2"])
    g1 = jax.nn.sigmoid(params["gate1"] / temp).astype(jnp.float32)
    g2 = jax.nn.sigmoid(params["gate2"] / temp).astype(jnp.float32)

    # fold expert gates into the weights (kernel then needs no gate operand)
    lw1g = lw1 * g1[:, None, None, None, None]
    lw2g = lw2 * g2[:, None, None, None, None]

    top = [None] * (ers * ers)
    bot = [None] * (ers * ers)
    top[0] = params["weights1"]                    # region (0:m1, 0:m2), gate = 1
    bot[(ers - 1) * ers] = params["weights2"]      # region (H-m1:H, 0:m2), gate = 1
    for e, (ri, ci) in enumerate(_expert_grid_indices(E, ers)):
        top[ri * ers + ci] = lw1g[e]
        bot[(ers - 1 - ri) * ers + ci] = lw2g[e]

    w_tiles = jnp.stack(top + bot).astype(jnp.complex64)   # (S, Cin, Cout, m1, m2)
    sploss = jnp.mean(g1) + jnp.mean(g2)
    return w_tiles, sploss


def _gather_tiles(x_ft, m1, m2, ers):
    """x_ft: (B, C, H, Wf) -> (B, C, 2*ers*ers, m1, m2) in tile-grid slot order."""
    B, C, H, _ = x_ft.shape
    HM, WM = ers * m1, ers * m2

    def blk(xb):  # (B, C, HM, WM) -> (B, C, ers*ers, m1, m2)
        xb = xb.reshape(B, C, ers, m1, ers, m2)
        xb = jnp.transpose(xb, (0, 1, 2, 4, 3, 5))
        return xb.reshape(B, C, ers * ers, m1, m2)

    return jnp.concatenate([blk(x_ft[:, :, :HM, :WM]),
                            blk(x_ft[:, :, H - HM:, :WM])], axis=2)


def _scatter_tiles(out_tiles, H, Wf):
    """(B, Cout, 2*ers*ers, m1, m2) -> (B, Cout, H, Wf), zeros elsewhere."""
    B, Cout, S, m1, m2 = out_tiles.shape
    ers = int(round(math.sqrt(S // 2)))
    HM, WM = ers * m1, ers * m2
    t = out_tiles.reshape(B, Cout, 2, ers, ers, m1, m2)

    def blk(xb):  # (B, Cout, ers, ers, m1, m2) -> (B, Cout, HM, WM)
        xb = jnp.transpose(xb, (0, 1, 2, 4, 3, 5))
        return xb.reshape(B, Cout, HM, WM)

    out_ft = jnp.zeros((B, Cout, H, Wf), jnp.complex64)
    out_ft = out_ft.at[:, :, :HM, :WM].set(blk(t[:, :, 0]))
    out_ft = out_ft.at[:, :, H - HM:, :WM].set(blk(t[:, :, 1]))
    return out_ft


def spectral_conv2d_lora_gatedmoe_forward(x, params, cfg):
    """Training-mode forward. x: (B, Cin, H, W) float32. Returns (out, sploss)."""
    B, Cin, H, W = x.shape
    m1, m2, E = cfg["modes1"], cfg["modes2"], cfg["num_experts"]
    ers = int(math.sqrt(E + 1))
    Wf = W // 2 + 1
    # The module's slot regions tile two disjoint (ers*m1, ers*m2) spectrum blocks;
    # assert the geometric preconditions of the fused gather/scatter.
    assert ers * ers == E + 1, "num_experts must equal ers^2 - 1"
    assert H >= 2 * ers * m1 and Wf >= ers * m2, "frequency blocks must be in-bounds/disjoint"

    x_ft = jnp.fft.rfft2(x)                               # (B, Cin, H, Wf) c64 (JAX glue)
    w_tiles, sploss = _build_tile_weights(params, cfg)    # (S, Cin, Cout, m1, m2)
    x_tiles = _gather_tiles(x_ft, m1, m2, ers)            # (B, Cin, S, m1, m2)

    out_tiles = compl_mul_tiles_pallas(x_tiles, w_tiles)  # (B, Cout, S, m1, m2)
    out_ft = _scatter_tiles(out_tiles, H, Wf)
    out = jnp.fft.irfft2(out_ft, s=(H, W))
    # TODO(synk): eval-mode top-k expert selection (select_top_k_experts) and the
    # gate_on_data=True data-dependent gating are not implemented; only the
    # training-mode forward with scalar gates (module default) is reproduced.
    return out, sploss


# -------------------- pure-JAX reference (mirrors PyTorch order) --------------
def reference_forward(x, params, cfg):
    B, Cin, H, W = x.shape
    Cout = cfg["out_channels"]
    m1, m2, E = cfg["modes1"], cfg["modes2"], cfg["num_experts"]
    scaling, temp = cfg["scaling"], cfg["temperature"]
    ers = int(math.sqrt(E + 1))
    Wf = W // 2 + 1

    x_ft = jnp.fft.rfft2(x)
    lw1 = scaling * jnp.einsum("eri,eorxy->eioxy", params["lora_a1"], params["lora_b1"])
    lw2 = scaling * jnp.einsum("eri,eorxy->eioxy", params["lora_a2"], params["lora_b2"])
    g1 = jax.nn.sigmoid(params["gate1"] / temp)
    g2 = jax.nn.sigmoid(params["gate2"] / temp)

    def cmul(a, w):
        return jnp.einsum("bixy,ioxy->boxy", a, w)

    out_ft = jnp.zeros((B, Cout, H, Wf), jnp.complex64)
    out_ft = out_ft.at[:, :, :m1, :m2].set(cmul(x_ft[:, :, :m1, :m2], params["weights1"]))
    out_ft = out_ft.at[:, :, H - m1:, :m2].set(cmul(x_ft[:, :, H - m1:, :m2], params["weights2"]))
    for e in range(E):
        ri, ci = (e + 1) // ers, (e + 1) % ers
        rs, re = m1 * ri, m1 * (ri + 1)
        cs, ce = m2 * ci, m2 * (ci + 1)
        out_ft = out_ft.at[:, :, rs:re, cs:ce].set(
            cmul(x_ft[:, :, rs:re, cs:ce], lw1[e]) * g1[e])
        out_ft = out_ft.at[:, :, H - re:H - rs, cs:ce].set(
            cmul(x_ft[:, :, H - re:H - rs, cs:ce], lw2[e]) * g2[e])
    out = jnp.fft.irfft2(out_ft, s=(H, W))
    sploss = jnp.mean(g1) + jnp.mean(g2)
    return out, sploss


# ------------------------------ parameter init --------------------------------
def init_params(key, Cin, Cout, m1, m2, rank, num_experts):
    def c_uniform(k, shape):
        kr, ki = jax.random.split(k)
        return (jax.random.uniform(kr, shape) + 1j * jax.random.uniform(ki, shape)).astype(jnp.complex64)

    def c_normal(k, shape):
        kr, ki = jax.random.split(k)
        return (jax.random.normal(kr, shape) + 1j * jax.random.normal(ki, shape)).astype(jnp.complex64)

    ks = jax.random.split(key, 6)
    scale = 1.0 / (Cin * Cout)
    return {
        "weights1": scale * c_uniform(ks[0], (Cin, Cout, m1, m2)),
        "weights2": scale * c_uniform(ks[1], (Cin, Cout, m1, m2)),
        "lora_a1": 0.02 * c_normal(ks[2], (num_experts, rank, Cin)),
        "lora_b1": 0.02 * c_normal(ks[3], (num_experts, Cout, rank, m1, m2)),
        "lora_a2": 0.02 * c_normal(ks[4], (num_experts, rank, Cin)),
        "lora_b2": 0.02 * c_normal(ks[5], (num_experts, Cout, rank, m1, m2)),
        "gate1": jnp.zeros((num_experts,), jnp.float32),   # nn.Parameter(torch.zeros(1)) per expert
        "gate2": jnp.zeros((num_experts,), jnp.float32),
    }


if __name__ == "__main__":
    B, Cin, Cout, H, W = 2, 4, 4, 32, 32
    m1 = m2 = 4
    rank, num_experts, scaling = 4, 15, 0.1
    cfg = dict(in_channels=Cin, out_channels=Cout, modes1=m1, modes2=m2,
               num_experts=num_experts, scaling=scaling, temperature=1.0)

    key = jax.random.PRNGKey(0)
    k_param, k_x = jax.random.split(key)
    params = init_params(k_param, Cin, Cout, m1, m2, rank, num_experts)
    x = jax.random.normal(k_x, (B, Cin, H, W), jnp.float32)

    fwd = jax.jit(lambda xx, pp: spectral_conv2d_lora_gatedmoe_forward(xx, pp, cfg))
    out, sploss = fwd(x, params)
    jax.block_until_ready((out, sploss))

    # sanity check against a pure-JAX reference that follows the exact PyTorch order
    out_ref, sploss_ref = reference_forward(x, params, cfg)
    assert out.shape == (B, Cout, H, W) and out.dtype == jnp.float32
    assert jnp.allclose(out, out_ref, atol=1e-4, rtol=1e-3)
    assert jnp.allclose(sploss, sploss_ref, atol=1e-6)

    print("KERNEL_OK")
</pallas_src>

<mosaic_0001>
module attributes {stable_mosaic.version = 11 : i64} {
  func.func @_spectral_moe_kernel(%arg0: memref<4x2x8x512xf32, #tpu.memory_space<vmem>>, %arg1: memref<4x2x8x512xf32, #tpu.memory_space<vmem>>, %arg2: memref<2x8x512xf32, #tpu.memory_space<vmem>>) attributes {dimension_semantics = [], scalar_prefetch = 0 : i64, scratch_operands = 0 : i64, tpu.core_type = #tpu.core_type<tc>} {
    %cst = arith.constant 0.000000e+00 : f32
    %0 = vector.broadcast %cst : f32 to vector<8x512xf32>
    %cst_0 = arith.constant 0.000000e+00 : f32
    %1 = vector.broadcast %cst_0 : f32 to vector<8x512xf32>
    %c0 = arith.constant 0 : index
    %c0_1 = arith.constant 0 : index
    %c0_2 = arith.constant 0 : index
    %c0_3 = arith.constant 0 : index
    %2 = vector.load %arg0[%c0, %c0_1, %c0_2, %c0_3] : memref<4x2x8x512xf32, #tpu.memory_space<vmem>>, vector<1x1x8x512xf32>
    %3 = vector.shape_cast %2 : vector<1x1x8x512xf32> to vector<8x512xf32>
    %c0_4 = arith.constant 0 : index
    %c1 = arith.constant 1 : index
    %c0_5 = arith.constant 0 : index
    %c0_6 = arith.constant 0 : index
    %4 = vector.load %arg0[%c0_4, %c1, %c0_5, %c0_6] : memref<4x2x8x512xf32, #tpu.memory_space<vmem>>, vector<1x1x8x512xf32>
    %5 = vector.shape_cast %4 : vector<1x1x8x512xf32> to vector<8x512xf32>
    %c0_7 = arith.constant 0 : index
    %c0_8 = arith.constant 0 : index
    %c0_9 = arith.constant 0 : index
    %c0_10 = arith.constant 0 : index
    %6 = vector.load %arg1[%c0_7, %c0_8, %c0_9, %c0_10] : memref<4x2x8x512xf32, #tpu.memory_space<vmem>>, vector<1x1x8x512xf32>
    %7 = vector.shape_cast %6 : vector<1x1x8x512xf32> to vector<8x512xf32>
    %c0_11 = arith.constant 0 : index
    %c1_12 = arith.constant 1 : index
    %c0_13 = arith.constant 0 : index
    %c0_14 = arith.constant 0 : index
    %8 = vector.load %arg1[%c0_11, %c1_12, %c0_13, %c0_14] : memref<4x2x8x512xf32, #tpu.memory_space<vmem>>, vector<1x1x8x512xf32>
    %9 = vector.shape_cast %8 : vector<1x1x8x512xf32> to vector<8x512xf32>
    %10 = arith.mulf %3, %7 : vector<8x512xf32>
    %11 = arith.addf %0, %10 : vector<8x512xf32>
    %12 = arith.mulf %5, %9 : vector<8x512xf32>
    %13 = arith.subf %11, %12 : vector<8x512xf32>
    %14 = arith.mulf %3, %9 : vector<8x512xf32>
    %15 = arith.addf %1, %14 : vector<8x512xf32>
    %16 = arith.mulf %5, %7 : vector<8x512xf32>
    %17 = arith.addf %15, %16 : vector<8x512xf32>
    %c1_15 = arith.constant 1 : index
    %c0_16 = arith.constant 0 : index
    %c0_17 = arith.constant 0 : index
    %c0_18 = arith.constant 0 : index
    %18 = vector.load %arg0[%c1_15, %c0_16, %c0_17, %c0_18] : memref<4x2x8x512xf32, #tpu.memory_space<vmem>>, vector<1x1x8x512xf32>
    %19 = vector.shape_cast %18 : vector<1x1x8x512xf32> to vector<8x512xf32>
    %c1_19 = arith.constant 1 : index
    %c1_20 = arith.constant 1 : index
    %c0_21 = arith.constant 0 : index
    %c0_22 = arith.constant 0 : index
    %20 = vector.load %arg0[%c1_19, %c1_20, %c0_21, %c0_22] : memref<4x2x8x512xf32, #tpu.memory_space<vmem>>, vector<1x1x8x512xf32>
    %21 = vector.shape_cast %20 : vector<1x1x8x512xf32> to vector<8x512xf32>
    %c1_23 = arith.constant 1 : index
    %c0_24 = arith.constant 0 : index
    %c0_25 = arith.constant 0 : index
    %c0_26 = arith.constant 0 : index
    %22 = vector.load %arg1[%c1_23, %c0_24, %c0_25, %c0_26] : memref<4x2x8x512xf32, #tpu.memory_space<vmem>>, vector<1x1x8x512xf32>
    %23 = vector.shape_cast %22 : vector<1x1x8x512xf32> to vector<8x512xf32>
    %c1_27 = arith.constant 1 : index
    %c1_28 = arith.constant 1 : index
    %c0_29 = arith.constant 0 : index
    %c0_30 = arith.constant 0 : index
    %24 = vector.load %arg1[%c1_27, %c1_28, %c0_29, %c0_30] : memref<4x2x8x512xf32, #tpu.memory_space<vmem>>, vector<1x1x8x512xf32>
    %25 = vector.shape_cast %24 : vector<1x1x8x512xf32> to vector<8x512xf32>
    %26 = arith.mulf %19, %23 : vector<8x512xf32>
    %27 = arith.addf %13, %26 : vector<8x512xf32>
    %28 = arith.mulf %21, %25 : vector<8x512xf32>
    %29 = arith.subf %27, %28 : vector<8x512xf32>
    %30 = arith.mulf %19, %25 : vector<8x512xf32>
    %31 = arith.addf %17, %30 : vector<8x512xf32>
    %32 = arith.mulf %21, %23 : vector<8x512xf32>
    %33 = arith.addf %31, %32 : vector<8x512xf32>
    %c2 = arith.constant 2 : index
    %c0_31 = arith.constant 0 : index
    %c0_32 = arith.constant 0 : index
    %c0_33 = arith.constant 0 : index
    %34 = vector.load %arg0[%c2, %c0_31, %c0_32, %c0_33] : memref<4x2x8x512xf32, #tpu.memory_space<vmem>>, vector<1x1x8x512xf32>
    %35 = vector.shape_cast %34 : vector<1x1x8x512xf32> to vector<8x512xf32>
    %c2_34 = arith.constant 2 : index
    %c1_35 = arith.constant 1 : index
    %c0_36 = arith.constant 0 : index
    %c0_37 = arith.constant 0 : index
    %36 = vector.load %arg0[%c2_34, %c1_35, %c0_36, %c0_37] : memref<4x2x8x512xf32, #tpu.memory_space<vmem>>, vector<1x1x8x512xf32>
    %37 = vector.shape_cast %36 : vector<1x1x8x512xf32> to vector<8x512xf32>
    %c2_38 = arith.constant 2 : index
    %c0_39 = arith.constant 0 : index
    %c0_40 = arith.constant 0 : index
    %c0_41 = arith.constant 0 : index
    %38 = vector.load %arg1[%c2_38, %c0_39, %c0_40, %c0_41] : memref<4x2x8x512xf32, #tpu.memory_space<vmem>>, vector<1x1x8x512xf32>
    %39 = vector.shape_cast %38 : vector<1x1x8x512xf32> to vector<8x512xf32>
    %c2_42 = arith.constant 2 : index
    %c1_43 = arith.constant 1 : index
    %c0_44 = arith.constant 0 : index
    %c0_45 = arith.constant 0 : index
    %40 = vector.load %arg1[%c2_42, %c1_43, %c0_44, %c0_45] : memref<4x2x8x512xf32, #tpu.memory_space<vmem>>, vector<1x1x8x512xf32>
    %41 = vector.shape_cast %40 : vector<1x1x8x512xf32> to vector<8x512xf32>
    %42 = arith.mulf %35, %39 : vector<8x512xf32>
    %43 = arith.addf %29, %42 : vector<8x512xf32>
    %44 = arith.mulf %37, %41 : vector<8x512xf32>
    %45 = arith.subf %43, %44 : vector<8x512xf32>
    %46 = arith.mulf %35, %41 : vector<8x512xf32>
    %47 = arith.addf %33, %46 : vector<8x512xf32>
    %48 = arith.mulf %37, %39 : vector<8x512xf32>
    %49 = arith.addf %47, %48 : vector<8x512xf32>
    %c3 = arith.constant 3 : index
    %c0_46 = arith.constant 0 : index
    %c0_47 = arith.constant 0 : index
    %c0_48 = arith.constant 0 : index
    %50 = vector.load %arg0[%c3, %c0_46, %c0_47, %c0_48] : memref<4x2x8x512xf32, #tpu.memory_space<vmem>>, vector<1x1x8x512xf32>
    %51 = vector.shape_cast %50 : vector<1x1x8x512xf32> to vector<8x512xf32>
    %c3_49 = arith.constant 3 : index
    %c1_50 = arith.constant 1 : index
    %c0_51 = arith.constant 0 : index
    %c0_52 = arith.constant 0 : index
    %52 = vector.load %arg0[%c3_49, %c1_50, %c0_51, %c0_52] : memref<4x2x8x512xf32, #tpu.memory_space<vmem>>, vector<1x1x8x512xf32>
    %53 = vector.shape_cast %52 : vector<1x1x8x512xf32> to vector<8x512xf32>
    %c3_53 = arith.constant 3 : index
    %c0_54 = arith.constant 0 : index
    %c0_55 = arith.constant 0 : index
    %c0_56 = arith.constant 0 : index
    %54 = vector.load %arg1[%c3_53, %c0_54, %c0_55, %c0_56] : memref<4x2x8x512xf32, #tpu.memory_space<vmem>>, vector<1x1x8x512xf32>
    %55 = vector.shape_cast %54 : vector<1x1x8x512xf32> to vector<8x512xf32>
    %c3_57 = arith.constant 3 : index
    %c1_58 = arith.constant 1 : index
    %c0_59 = arith.constant 0 : index
    %c0_60 = arith.constant 0 : index
    %56 = vector.load %arg1[%c3_57, %c1_58, %c0_59, %c0_60] : memref<4x2x8x512xf32, #tpu.memory_space<vmem>>, vector<1x1x8x512xf32>
    %57 = vector.shape_cast %56 : vector<1x1x8x512xf32> to vector<8x512xf32>
    %58 = arith.mulf %51, %55 : vector<8x512xf32>
    %59 = arith.addf %45, %58 : vector<8x512xf32>
    %60 = arith.mulf %53, %57 : vector<8x512xf32>
    %61 = arith.subf %59, %60 : vector<8x512xf32>
    %62 = arith.mulf %51, %57 : vector<8x512xf32>
    %63 = arith.addf %49, %62 : vector<8x512xf32>
    %64 = arith.mulf %53, %55 : vector<8x512xf32>
    %65 = arith.addf %63, %64 : vector<8x512xf32>
    %c0_61 = arith.constant 0 : index
    %c0_62 = arith.constant 0 : index
    %c0_63 = arith.constant 0 : index
    %66 = vector.load %arg2[%c0_61, %c0_62, %c0_63] : memref<2x8x512xf32, #tpu.memory_space<vmem>>, vector<1x8x512xf32>
    %67 = vector.shape_cast %66 : vector<1x8x512xf32> to vector<8x512xf32>
    %68 = vector.shape_cast %61 : vector<8x512xf32> to vector<1x8x512xf32>
    tpu.vector_store %arg2[%c0_61, %c0_62, %c0_63], %68 {strides = array<i32>} : memref<2x8x512xf32, #tpu.memory_space<vmem>>, vector<1x8x512xf32>,
    %c1_64 = arith.constant 1 : index
    %c0_65 = arith.constant 0 : index
    %c0_66 = arith.constant 0 : index
    %69 = vector.load %arg2[%c1_64, %c0_65, %c0_66] : memref<2x8x512xf32, #tpu.memory_space<vmem>>, vector<1x8x512xf32>
    %70 = vector.shape_cast %69 : vector<1x8x512xf32> to vector<8x512xf32>
    %71 = vector.shape_cast %65 : vector<8x512xf32> to vector<1x8x512xf32>
    tpu.vector_store %arg2[%c1_64, %c0_65, %c0_66], %71 {strides = array<i32>} : memref<2x8x512xf32, #tpu.memory_space<vmem>>, vector<1x8x512xf32>,
    return
  }
}

</mosaic_0001>

<bundles_post_ra>
// kernel: custom-call.1
= control target key start
LH: loop header
LB: loop body
LE: loop exit
PB: predicated region body
PF: predicated region fallthrough
CT: control target
= control target key end

     0   :  { %s59_s0 = inlined_call_operand.hbm [shape: c64[4,4,4,4], index: 0, kind: input, shape index: {}]   ;;  %s60_s1 = inlined_call_operand.vmem [shape: f32[4,4,4,4], index: 1, kind: output, shape index: {}]  }
   0x1   :  { %s2_s8 = scalar_lea.hbm %s59_s0, 1024 }
   0x2   :  { %3 = vsyncpa [#allocation0], 0  ;;  %s4_s11 = sshll.u32 %s60_s1, 4  ;;  %s34_s14 = scalar_lea.hbm %s59_s0, 2048  ;;  %s5_s11 = int_to_ptr.vmem [resolvable:$true] %s4_s11 }
   0x3   :  { %p11_p0 = scmp.ne.s32.totalorder %s2_s8, %s34_s14  ;;  %p13_p1 = scmp.lt.u32.totalorder %s2_s8, %s59_s0 }
   0x4   :  { %p14_p2 = scmp.lt.u32.totalorder %s34_s14, %s34_s14  ;;  %p16_p4 = scmp.lt.u32.totalorder %s34_s14, %s2_s8 }
   0x6   :  { %p15_p3 = por %p14_p2, %p13_p1 }
   0x8   :  { %p17_p5 = por %p16_p4, %p15_p3 }
   0xa   :  { %p18_p6 = pnand %p17_p5, %p11_p0 }
   0xc   :  { %21 = shalt.err (!%p18_p6)  }
   0xd   :  { %s22_s17 = scalar_lea.vmem %s5_s11, 1024  ;;  %p27_p8 = scmp.lt.s32.totalorder %s5_s11, %s5_s11 }
   0xe   :  { %p23_p7 = scmp.ne.s32.totalorder %s5_s11, %s22_s17  ;;  %p28_p9 = scmp.lt.s32.totalorder %s22_s17, %s22_s17 }
  0x10   :  { %p29_p10 = por %p28_p9, %p27_p8 }
  0x12   :  { %p30_p11 = pnand %p29_p10, %p23_p7 }
  0x14   :  { %33 = shalt.err (!%p30_p11)  }
  0x15   :  { %7 = dma.hbm_to_vmem [thread:$0]  %s2_s8, 1024, %s5_s11, [#allocation0] }
  0x16   :  { %35 = dma.done.wait [#allocation0], 1024  }
  0x17   :  { %36 = vsyncadd [#allocation0], 4294966272 }
  0x18   :  { %9 = vsyncpa [#allocation0], 1 }

// kernel: custom-call.2
= control target key start
LH: loop header
LB: loop body
LE: loop exit
PB: predicated region body
PF: predicated region fallthrough
CT: control target
= control target key end

     0   :  { %2 = vsyncpa [#allocation0], 0  ;;  %s61_s0 = inlined_call_operand.hbm [shape: c64[15,4,4], index: 0, kind: input, shape index: {}]   ;;  %s62_s1 = inlined_call_operand.vmem [shape: f32[15,4,4], index: 1, kind: output, shape index: {}]  }
   0x1   :  { %s3_s8 = sshll.u32 %s62_s1, 4  ;;  %s9_s11 = scalar_lea.hbm %s61_s0, 256  ;;  %s4_s8 = int_to_ptr.vmem [resolvable:$true] %s3_s8 }
   0x2   :  { %p10_p0 = scmp.ne.s32.totalorder %s61_s0, %s9_s11  ;;  %s11_s16 = scalar_lea.hbm %s61_s0, 512 }
   0x3   :  { %p12_p1 = scmp.lt.u32.totalorder %s11_s16, %s9_s11  ;;  %p13_p2 = scmp.lt.u32.totalorder %s9_s11, %s61_s0 }
   0x5   :  { %p14_p3 = por %p13_p2, %p12_p1 }
   0x7   :  { %p15_p4 = pnand %p14_p3, %p10_p0 }
   0x9   :  { %18 = shalt.err (!%p15_p4)  }
   0xa   :  { %s19_s1 = scalar_lea.vmem %s4_s8, 256  ;;  %p24_p6 = scmp.lt.s32.totalorder %s4_s8, %s4_s8 }
   0xb   :  { %p20_p5 = scmp.ne.s32.totalorder %s4_s8, %s19_s1  ;;  %p25_p7 = scmp.lt.s32.totalorder %s19_s1, %s19_s1 }
   0xd   :  { %p26_p8 = por %p25_p7, %p24_p6 }
   0xf   :  { %p27_p9 = pnand %p26_p8, %p20_p5 }
  0x11   :  { %30 = shalt.err (!%p27_p9)  }
  0x12   :  { %6 = dma.hbm_to_vmem [thread:$0]  %s61_s0, 256, %s4_s8, [#allocation0] }
  0x13   :  { %31 = dma.done.wait [#allocation0], 256  }
  0x14   :  { %32 = vsyncadd [#allocation0], 4294967040 }
  0x15   :  { %8 = vsyncpa [#allocation0], 1 }

// kernel: custom-call.3
= control target key start
LH: loop header
LB: loop body
LE: loop exit
PB: predicated region body
PF: predicated region fallthrough
CT: control target
= control target key end

     0   :  { %s59_s0 = inlined_call_operand.hbm [shape: c64[15,4,4], index: 0, kind: input, shape index: {}]   ;;  %s60_s1 = inlined_call_operand.vmem [shape: f32[15,4,4], index: 1, kind: output, shape index: {}]  }
   0x1   :  { %s2_s8 = scalar_lea.hbm %s59_s0, 256 }
   0x2   :  { %3 = vsyncpa [#allocation0], 0  ;;  %s4_s11 = sshll.u32 %s60_s1, 4  ;;  %s34_s14 = scalar_lea.hbm %s59_s0, 512  ;;  %s5_s11 = int_to_ptr.vmem [resolvable:$true] %s4_s11 }
   0x3   :  { %p11_p0 = scmp.ne.s32.totalorder %s2_s8, %s34_s14  ;;  %p13_p1 = scmp.lt.u32.totalorder %s2_s8, %s59_s0 }
   0x4   :  { %p14_p2 = scmp.lt.u32.totalorder %s34_s14, %s34_s14  ;;  %p16_p4 = scmp.lt.u32.totalorder %s34_s14, %s2_s8 }
   0x6   :  { %p15_p3 = por %p14_p2, %p13_p1 }
   0x8   :  { %p17_p5 = por %p16_p4, %p15_p3 }
   0xa   :  { %p18_p6 = pnand %p17_p5, %p11_p0 }
   0xc   :  { %21 = shalt.err (!%p18_p6)  }
   0xd   :  { %s22_s17 = scalar_lea.vmem %s5_s11, 256  ;;  %p27_p8 = scmp.lt.s32.totalorder %s5_s11, %s5_s11 }
   0xe   :  { %p23_p7 = scmp.ne.s32.totalorder %s5_s11, %s22_s17  ;;  %p28_p9 = scmp.lt.s32.totalorder %s22_s17, %s22_s17 }
  0x10   :  { %p29_p10 = por %p28_p9, %p27_p8 }
  0x12   :  { %p30_p11 = pnand %p29_p10, %p23_p7 }
  0x14   :  { %33 = shalt.err (!%p30_p11)  }
  0x15   :  { %7 = dma.hbm_to_vmem [thread:$0]  %s2_s8, 256, %s5_s11, [#allocation0] }
  0x16   :  { %35 = dma.done.wait [#allocation0], 256  }
  0x17   :  { %36 = vsyncadd [#allocation0], 4294967040 }
  0x18   :  { %9 = vsyncpa [#allocation0], 1 }

// kernel: custom-call.4
= control target key start
LH: loop header
LB: loop body
LE: loop exit
PB: predicated region body
PF: predicated region fallthrough
CT: control target
= control target key end

     0   :  { %2 = vsyncpa [#allocation0], 0  ;;  %s61_s0 = inlined_call_operand.hbm [shape: c64[15,4,4,4,4], index: 0, kind: input, shape index: {}]   ;;  %s62_s1 = inlined_call_operand.vmem [shape: f32[15,4,4,4,4], index: 1, kind: output, shape index: {}]  }
   0x1   :  { %s3_s8 = sshll.u32 %s62_s1, 4  ;;  %s9_s11 = scalar_lea.hbm %s61_s0, 4096  ;;  %s4_s8 = int_to_ptr.vmem [resolvable:$true] %s3_s8 }
   0x2   :  { %p10_p0 = scmp.ne.s32.totalorder %s61_s0, %s9_s11  ;;  %s11_s16 = scalar_lea.hbm %s61_s0, 8192 }
   0x3   :  { %p12_p1 = scmp.lt.u32.totalorder %s11_s16, %s9_s11  ;;  %p13_p2 = scmp.lt.u32.totalorder %s9_s11, %s61_s0 }
   0x5   :  { %p14_p3 = por %p13_p2, %p12_p1 }
   0x7   :  { %p15_p4 = pnand %p14_p3, %p10_p0 }
   0x9   :  { %18 = shalt.err (!%p15_p4)  }
   0xa   :  { %s19_s1 = scalar_lea.vmem %s4_s8, 4096  ;;  %p24_p6 = scmp.lt.s32.totalorder %s4_s8, %s4_s8 }
   0xb   :  { %p20_p5 = scmp.ne.s32.totalorder %s4_s8, %s19_s1  ;;  %p25_p7 = scmp.lt.s32.totalorder %s19_s1, %s19_s1 }
   0xd   :  { %p26_p8 = por %p25_p7, %p24_p6 }
   0xf   :  { %p27_p9 = pnand %p26_p8, %p20_p5 }
  0x11   :  { %30 = shalt.err (!%p27_p9)  }
  0x12   :  { %6 = dma.hbm_to_vmem [thread:$0]  %s61_s0, 4096, %s4_s8, [#allocation0] }
  0x13   :  { %31 = dma.done.wait [#allocation0], 4096  }
  0x14   :  { %32 = vsyncadd [#allocation0], 4294963200 }
  0x15   :  { %8 = vsyncpa [#allocation0], 1 }

// kernel: custom-call.5
= control target key start
LH: loop header
LB: loop body
LE: loop exit
PB: predicated region body
PF: predicated region fallthrough
CT: control target
= control target key end

     0   :  { %s59_s0 = inlined_call_operand.hbm [shape: c64[15,4,4,4,4], index: 0, kind: input, shape index: {}]   ;;  %s60_s1 = inlined_call_operand.vmem [shape: f32[15,4,4,4,4], index: 1, kind: output, shape index: {}]  }
   0x1   :  { %s2_s8 = scalar_lea.hbm %s59_s0, 4096 }
   0x2   :  { %3 = vsyncpa [#allocation0], 0  ;;  %s4_s11 = sshll.u32 %s60_s1, 4  ;;  %s34_s14 = scalar_lea.hbm %s59_s0, 8192  ;;  %s5_s11 = int_to_ptr.vmem [resolvable:$true] %s4_s11 }
   0x3   :  { %p11_p0 = scmp.ne.s32.totalorder %s2_s8, %s34_s14  ;;  %p13_p1 = scmp.lt.u32.totalorder %s2_s8, %s59_s0 }
   0x4   :  { %p14_p2 = scmp.lt.u32.totalorder %s34_s14, %s34_s14  ;;  %p16_p4 = scmp.lt.u32.totalorder %s34_s14, %s2_s8 }
   0x6   :  { %p15_p3 = por %p14_p2, %p13_p1 }
   0x8   :  { %p17_p5 = por %p16_p4, %p15_p3 }
   0xa   :  { %p18_p6 = pnand %p17_p5, %p11_p0 }
   0xc   :  { %21 = shalt.err (!%p18_p6)  }
   0xd   :  { %s22_s17 = scalar_lea.vmem %s5_s11, 4096  ;;  %p27_p8 = scmp.lt.s32.totalorder %s5_s11, %s5_s11 }
   0xe   :  { %p23_p7 = scmp.ne.s32.totalorder %s5_s11, %s22_s17  ;;  %p28_p9 = scmp.lt.s32.totalorder %s22_s17, %s22_s17 }
  0x10   :  { %p29_p10 = por %p28_p9, %p27_p8 }
  0x12   :  { %p30_p11 = pnand %p29_p10, %p23_p7 }
  0x14   :  { %33 = shalt.err (!%p30_p11)  }
  0x15   :  { %7 = dma.hbm_to_vmem [thread:$0]  %s2_s8, 4096, %s5_s11, [#allocation0] }
  0x16   :  { %35 = dma.done.wait [#allocation0], 4096  }
  0x17   :  { %36 = vsyncadd [#allocation0], 4294963200 }
  0x18   :  { %9 = vsyncpa [#allocation0], 1 }

// kernel: custom-call
= control target key start
LH: loop header
LB: loop body
LE: loop exit
PB: predicated region body
PF: predicated region fallthrough
CT: control target
= control target key end

     0   :  { %2 = vsyncpa [#allocation0], 0  ;;  %s61_s0 = inlined_call_operand.hbm [shape: c64[4,4,4,4], index: 0, kind: input, shape index: {}]   ;;  %s62_s1 = inlined_call_operand.vmem [shape: f32[4,4,4,4], index: 1, kind: output, shape index: {}]  }
   0x1   :  { %s3_s8 = sshll.u32 %s62_s1, 4  ;;  %s9_s11 = scalar_lea.hbm %s61_s0, 1024  ;;  %s4_s8 = int_to_ptr.vmem [resolvable:$true] %s3_s8 }
   0x2   :  { %p10_p0 = scmp.ne.s32.totalorder %s61_s0, %s9_s11  ;;  %s11_s16 = scalar_lea.hbm %s61_s0, 2048 }
   0x3   :  { %p12_p1 = scmp.lt.u32.totalorder %s11_s16, %s9_s11  ;;  %p13_p2 = scmp.lt.u32.totalorder %s9_s11, %s61_s0 }
   0x5   :  { %p14_p3 = por %p13_p2, %p12_p1 }
   0x7   :  { %p15_p4 = pnand %p14_p3, %p10_p0 }
   0x9   :  { %18 = shalt.err (!%p15_p4)  }
   0xa   :  { %s19_s1 = scalar_lea.vmem %s4_s8, 1024  ;;  %p24_p6 = scmp.lt.s32.totalorder %s4_s8, %s4_s8 }
   0xb   :  { %p20_p5 = scmp.ne.s32.totalorder %s4_s8, %s19_s1  ;;  %p25_p7 = scmp.lt.s32.totalorder %s19_s1, %s19_s1 }
   0xd   :  { %p26_p8 = por %p25_p7, %p24_p6 }
   0xf   :  { %p27_p9 = pnand %p26_p8, %p20_p5 }
  0x11   :  { %30 = shalt.err (!%p27_p9)  }
  0x12   :  { %6 = dma.hbm_to_vmem [thread:$0]  %s61_s0, 1024, %s4_s8, [#allocation0] }
  0x13   :  { %31 = dma.done.wait [#allocation0], 1024  }
  0x14   :  { %32 = vsyncadd [#allocation0], 4294966272 }
  0x15   :  { %8 = vsyncpa [#allocation0], 1 }

// kernel: _lambda_.1
= control target key start
LH: loop header
LB: loop body
LE: loop exit
PB: predicated region body
PF: predicated region fallthrough
CT: control target
= control target key end

     0   :  { %s591_s0 = inlined_call_operand.vmem [shape: f32[4,2,8,512], index: 0, kind: input, shape index: {}]   ;;  %s592_s1 = inlined_call_operand.vmem [shape: f32[4,2,8,512], index: 1, kind: input, shape index: {}]   ;;  %s593_s2 = inlined_call_operand.vmem [shape: f32[2,8,512], index: 2, kind: output, shape index: {}]  }
   0x1   :  { %v11_v0 = vld [vmem:[%s591_s0] sm:$0xff]  ;;  %v12_v29 = vld [vmem:[%s591_s0 + $0x8] sm:$0xff]  ;;  %v406_v61 = vld [vmem:[%s591_s0 + $0x10] sm:$0xff] }
   0x2   :  { %v230_v1 = vld [vmem:[%s591_s0 + $0x20] sm:$0xff]  ;;  %v231_v30 = vld [vmem:[%s591_s0 + $0x28] sm:$0xff] }
   0x3   :  { %v20_v2 = vld [vmem:[%s592_s1] sm:$0xff]  ;;  %v21_v33 = vld [vmem:[%s592_s1 + $0x8] sm:$0xff] }
   0x4   :  { %v234_v3 = vld [vmem:[%s592_s1 + $0x20] sm:$0xff]  ;;  %v29_v4 = vmul.f32 %v20_v2, %v11_v0  ;;  %v53_v7 = vmul.f32 %v230_v1, %v20_v2  ;;  %v235_v34 = vld [vmem:[%s592_s1 + $0x28] sm:$0xff]  ;;  %v30_v39 = vmul.f32 %v21_v33, %v12_v29  ;;  %v54_v45 = vmul.f32 %v231_v30, %v21_v33  ;;  %v485_v33 = vld [vmem:[%s592_s1 + $0xd0] sm:$0xff] }
   0x5   :  { %v238_v5 = vld [vmem:[%s591_s0 + $0x40] sm:$0xff]  ;;  %v37_v8 = vmul.f32 %v234_v3, %v230_v1  ;;  %v45_v12 = vmul.f32 %v234_v3, %v11_v0  ;;  %v239_v35 = vld [vmem:[%s591_s0 + $0x48] sm:$0xff]  ;;  %v38_v40 = vmul.f32 %v235_v34, %v231_v30  ;;  %v46_v44 = vmul.f32 %v235_v34, %v12_v29 }
   0x6   :  { %v242_v6 = vld [vmem:[%s591_s0 + $0x60] sm:$0xff]  ;;  %v243_v41 = vld [vmem:[%s591_s0 + $0x68] sm:$0xff] }
   0x7   :  { %v246_v9 = vld [vmem:[%s592_s1 + $0x40] sm:$0xff]  ;;  %v41_v18 = vsub.f32 %v29_v4, %v37_v8  ;;  %v57_v23 = vadd.f32 %v53_v7, %v45_v12  ;;  %v247_v42 = vld [vmem:[%s592_s1 + $0x48] sm:$0xff]  ;;  %v42_v53 = vsub.f32 %v30_v39, %v38_v40  ;;  %v58_v56 = vadd.f32 %v54_v45, %v46_v44  ;;  %v412_v4 = vld [vmem:[%s591_s0 + $0x30] sm:$0xff] }
   0x8   :  { %v250_v10 = vld [vmem:[%s592_s1 + $0x60] sm:$0xff]  ;;  %v81_v13 = vmul.f32 %v246_v9, %v238_v5  ;;  %v105_v24 = vmul.f32 %v246_v9, %v242_v6  ;;  %v251_v43 = vld [vmem:[%s592_s1 + $0x68] sm:$0xff]  ;;  %v82_v48 = vmul.f32 %v247_v42, %v239_v35  ;;  %v106_v0 = vmul.f32 %v247_v42, %v243_v41  ;;  %v436_v12 = vld [vmem:[%s591_s0 + $0x70] sm:$0xff] }
   0x9   :  { %v254_v11 = vld [vmem:[%s591_s0 + $0x80] sm:$0xff]  ;;  %v97_v17 = vmul.f32 %v250_v10, %v238_v5  ;;  %v89_v19 = vmul.f32 %v250_v10, %v242_v6  ;;  %v255_v49 = vld [vmem:[%s591_s0 + $0x88] sm:$0xff]  ;;  %v90_v54 = vmul.f32 %v251_v43, %v243_v41  ;;  %v98_v57 = vmul.f32 %v251_v43, %v239_v35  ;;  %v417_v5 = vld [vmem:[%s592_s1 + $0x10] sm:$0xff] }
   0xa   :  { %v258_v14 = vld [vmem:[%s591_s0 + $0xa0] sm:$0xff]  ;;  %v85_v32 = vadd.f32 %v81_v13, %v41_v18  ;;  %v387_v50 = vld [vmem:[%s591_s0 + $0xa8] sm:$0xff]  ;;  %v86_v1 = vadd.f32 %v82_v48, %v42_v53  ;;  %v422_v6 = vld [vmem:[%s592_s1 + $0x30] sm:$0xff]  ;;  %v31_v9 = vmul.f32 %v417_v5, %v406_v61 }
   0xb   :  { %v262_v15 = vld [vmem:[%s592_s1 + $0x80] sm:$0xff]  ;;  %v101_v36 = vadd.f32 %v97_v17, %v57_v23  ;;  %v263_v51 = vld [vmem:[%s592_s1 + $0x88] sm:$0xff]  ;;  %v102_v7 = vadd.f32 %v98_v57, %v58_v56  ;;  %v39_v10 = vmul.f32 %v422_v6, %v412_v4  ;;  %v441_v13 = vld [vmem:[%s592_s1 + $0x50] sm:$0xff] }
   0xc   :  { %v266_v16 = vld [vmem:[%s592_s1 + $0xa0] sm:$0xff]  ;;  %v133_v25 = vmul.f32 %v262_v15, %v254_v11  ;;  %v157_v37 = vmul.f32 %v262_v15, %v258_v14  ;;  %v93_v46 = vsub.f32 %v85_v32, %v89_v19  ;;  %v267_v55 = vld [vmem:[%s592_s1 + $0xa8] sm:$0xff]  ;;  %v134_v2 = vmul.f32 %v263_v51, %v255_v49  ;;  %v449_v17 = vld [vmem:[%s592_s1 + $0x70] sm:$0xff] }
   0xd   :  { %v270_v20 = vld [vmem:[%s591_s0 + $0xc0] sm:$0xff]  ;;  %v141_v26 = vmul.f32 %v266_v16, %v258_v14  ;;  %v149_v31 = vmul.f32 %v266_v16, %v254_v11  ;;  %v109_v52 = vadd.f32 %v105_v24, %v101_v36  ;;  %v271_v59 = vld [vmem:[%s591_s0 + $0xc8] sm:$0xff]  ;;  %v142_v3 = vmul.f32 %v267_v55, %v387_v50  ;;  %v431_v11 = vld [vmem:[%s591_s0 + $0x50] sm:$0xff] }
   0xe   :  { %v274_v21 = vld [vmem:[%s591_s0 + $0xe0] sm:$0xff]  ;;  %v137_v58 = vadd.f32 %v133_v25, %v93_v46  ;;  %v401_v60 = vld [vmem:[%s592_s1 + $0xc8] sm:$0xff]  ;;  %v94_v15 = vsub.f32 %v86_v1, %v90_v54  ;;  %v83_v18 = vmul.f32 %v441_v13, %v431_v11  ;;  %v456_v19 = vld [vmem:[%s591_s0 + $0x90] sm:$0xff]  ;;  %v43_v24 = vsub.f32 %v31_v9, %v39_v10 }
   0xf   :  { %v278_v22 = vld [vmem:[%s592_s1 + $0xc0] sm:$0xff]  ;;  %v153_v62 = vadd.f32 %v149_v31, %v109_v52  ;;  %v275_v16 = vld [vmem:[%s591_s0 + $0xe8] sm:$0xff]  ;;  %v91_v25 = vmul.f32 %v449_v17, %v436_v12  ;;  %v186_v30 = vmul.f32 %v401_v60, %v271_v59  ;;  %v268_v31 = vld [vmem:[%s592_s1 + $0xb0] sm:$0xff] }
  0x10   :  { %v282_v27 = vld [vmem:[%s592_s1 + $0xe0] sm:$0xff]  ;;  %v185_v28 = vmul.f32 %v278_v22, %v270_v20  ;;  %v368_v38 = vmul.f32 %v278_v22, %v274_v21  ;;  %v145_v8 = vsub.f32 %v137_v58, %v141_v26  ;;  %v283_v23 = vld [vmem:[%s592_s1 + $0xe8] sm:$0xff]  ;;  %v466_v26 = vld [vmem:[%s591_s0 + $0xb0] sm:$0xff] }
  0x11   :  { %v379_v47 = vmul.f32 %v282_v27, %v274_v21  ;;  %v201_v63 = vmul.f32 %v282_v27, %v270_v20  ;;  %v161_v14 = vadd.f32 %v157_v37, %v153_v62  ;;  %v110_v20 = vadd.f32 %v106_v0, %v102_v7  ;;  %v471_v27 = vld [vmem:[%s592_s1 + $0x90] sm:$0xff]  ;;  %v14_v40 = vld [vmem:[%s591_s0 + $0x18] sm:$0xff] }
  0x12   :  { %v150_v21 = vmul.f32 %v267_v55, %v255_v49  ;;  %v189_v22 = vadd.f32 %v185_v28, %v145_v8  ;;  %v138_v28 = vadd.f32 %v134_v2, %v94_v15  ;;  %v480_v32 = vld [vmem:[%s591_s0 + $0xd0] sm:$0xff]  ;;  %v194_v36 = vmul.f32 %v283_v23, %v275_v16  ;;  %v233_v41 = vld [vmem:[%s591_s0 + $0x38] sm:$0xff] }
  0x13   :  { %v205_v29 = vadd.f32 %v201_v63, %v161_v14  ;;  %v87_v37 = vadd.f32 %v83_v18, %v43_v24  ;;  %v135_v39 = vmul.f32 %v471_v27, %v456_v19  ;;  %v23_v42 = vld [vmem:[%s592_s1 + $0x18] sm:$0xff]  ;;  %v158_v49 = vmul.f32 %v263_v51, %v387_v50  ;;  %v517_v54 = vld [vmem:[%s591_s0 + $0xf0] sm:$0xff] }
  0x14   :  { %v154_v34 = vadd.f32 %v150_v21, %v110_v20  ;;  %v197_v35 = vsub.f32 %v189_v22, %v379_v47  ;;  %v146_v43 = vsub.f32 %v138_v28, %v142_v3  ;;  %v237_v44 = vld [vmem:[%s592_s1 + $0x38] sm:$0xff]  ;;  %v32_v45 = vmul.f32 %v23_v42, %v14_v40  ;;  %v284_v1 = vld [vmem:[%s592_s1 + $0xf0] sm:$0xff] }
  0x15   :  { %v241_v46 = vld [vmem:[%s591_s0 + $0x58] sm:$0xff]  ;;  %v213_v48 = vadd.f32 %v368_v38, %v205_v29  ;;  %v95_v52 = vsub.f32 %v87_v37, %v91_v25  ;;  %v143_v53 = vmul.f32 %v268_v31, %v466_v26  ;;  %v40_v55 = vmul.f32 %v237_v44, %v233_v41 }
  0x16   :  { %v245_v47 = vld [vmem:[%s591_s0 + $0x78] sm:$0xff]  ;;  %217 = vst [vmem:[%s593_s2] sm:$0xff] %v197_v35  ;;  %v202_v38 = vmul.f32 %v283_v23, %v271_v59  ;;  %v190_v57 = vadd.f32 %v186_v30, %v146_v43  ;;  %v162_v63 = vadd.f32 %v158_v49, %v154_v34  ;;  %v210_v59 = vmul.f32 %v401_v60, %v275_v16 }
  0x17   :  { %v249_v56 = vld [vmem:[%s592_s1 + $0x58] sm:$0xff]  ;;  %286 = vst [vmem:[%s593_s2 + $0x20] sm:$0xff] %v213_v48  ;;  %v139_v0 = vadd.f32 %v135_v39, %v95_v52  ;;  %v187_v2 = vmul.f32 %v485_v33, %v480_v32  ;;  %v44_v3 = vsub.f32 %v32_v45, %v40_v55  ;;  %v195_v10 = vmul.f32 %v284_v1, %v517_v54 }
  0x18   :  { %v253_v50 = vld [vmem:[%s592_s1 + $0x78] sm:$0xff]  ;;  %v84_v51 = vmul.f32 %v249_v56, %v241_v46  ;;  %v198_v9 = vsub.f32 %v190_v57, %v194_v36  ;;  %v206_v14 = vadd.f32 %v202_v38, %v162_v63  ;;  %v47_v60 = vmul.f32 %v422_v6, %v406_v61 }
  0x19   :  { %v257_v58 = vld [vmem:[%s591_s0 + $0x98] sm:$0xff]  ;;  %v92_v7 = vmul.f32 %v253_v50, %v245_v47  ;;  %v147_v15 = vsub.f32 %v139_v0, %v143_v53  ;;  %v55_v23 = vmul.f32 %v412_v4, %v417_v5  ;;  %v99_v24 = vmul.f32 %v449_v17, %v431_v11 }
  0x1a   :  { %v265_v62 = vld [vmem:[%s592_s1 + $0x98] sm:$0xff]  ;;  %v88_v16 = vadd.f32 %v84_v51, %v44_v3  ;;  %218 = vst [vmem:[%s593_s2 + $0x8] sm:$0xff] %v198_v9  ;;  %v214_v6 = vadd.f32 %v210_v59, %v206_v14  ;;  %v107_v30 = vmul.f32 %v441_v13, %v436_v12  ;;  %v151_v5 = vmul.f32 %v268_v31, %v456_v19 }
  0x1b   :  { %v261_v8 = vld [vmem:[%s591_s0 + $0xb8] sm:$0xff]  ;;  %v136_v20 = vmul.f32 %v265_v62, %v257_v58  ;;  %v191_v25 = vadd.f32 %v187_v2, %v147_v15  ;;  %v59_v28 = vadd.f32 %v55_v23, %v47_v60  ;;  %v48_v35 = vmul.f32 %v237_v44, %v14_v40 }
  0x1c   :  { %v269_v18 = vld [vmem:[%s592_s1 + $0xb8] sm:$0xff]  ;;  %v96_v29 = vsub.f32 %v88_v16, %v92_v7  ;;  %287 = vst [vmem:[%s593_s2 + $0x28] sm:$0xff] %v214_v6  ;;  %v56_v36 = vmul.f32 %v233_v41, %v23_v42  ;;  %v100_v39 = vmul.f32 %v253_v50, %v241_v46  ;;  %v108_v43 = vmul.f32 %v249_v56, %v245_v47 }
  0x1d   :  { %v273_v21 = vld [vmem:[%s591_s0 + $0xd8] sm:$0xff]  ;;  %v144_v61 = vmul.f32 %v269_v18, %v261_v8  ;;  %v199_v11 = vsub.f32 %v191_v25, %v195_v10  ;;  %v103_v37 = vadd.f32 %v99_v24, %v59_v28  ;;  %v159_v19 = vmul.f32 %v471_v27, %v466_v26 }
  0x1e   :  { %v281_v22 = vld [vmem:[%s592_s1 + $0xd8] sm:$0xff]  ;;  %v140_v17 = vadd.f32 %v136_v20, %v96_v29  ;;  %v60_v13 = vadd.f32 %v56_v36, %v48_v35  ;;  %v152_v40 = vmul.f32 %v269_v18, %v257_v58  ;;  %v203_v44 = vmul.f32 %v284_v1, %v480_v32 }
  0x1f   :  { %v277_v34 = vld [vmem:[%s591_s0 + $0xf8] sm:$0xff]  ;;  %v188_v4 = vmul.f32 %v281_v22, %v273_v21  ;;  %219 = vst [vmem:[%s593_s2 + $0x10] sm:$0xff] %v199_v11  ;;  %v111_v49 = vadd.f32 %v107_v30, %v103_v37  ;;  %v160_v52 = vmul.f32 %v265_v62, %v261_v8  ;;  %v211_v55 = vmul.f32 %v485_v33, %v517_v54 }
  0x20   :  { %v285_v12 = vld [vmem:[%s592_s1 + $0xf8] sm:$0xff]  ;;  %v148_v45 = vsub.f32 %v140_v17, %v144_v61  ;;  %v104_v31 = vadd.f32 %v100_v39, %v60_v13  ;;  %v212_v57 = vmul.f32 %v281_v22, %v277_v34 }
  0x21   :  { %v196_v48 = vmul.f32 %v285_v12, %v277_v34  ;;  %v155_v42 = vadd.f32 %v151_v5, %v111_v49  ;;  %v204_v38 = vmul.f32 %v285_v12, %v273_v21 }
  0x22   :  { %v192_v41 = vadd.f32 %v188_v4, %v148_v45  ;;  %v112_v46 = vadd.f32 %v108_v43, %v104_v31 }
  0x23   :  { %v163_v47 = vadd.f32 %v159_v19, %v155_v42 }
  0x24   :  { %v200_v53 = vsub.f32 %v192_v41, %v196_v48  ;;  %v156_v56 = vadd.f32 %v152_v40, %v112_v46 }
  0x25   :  { %v207_v26 = vadd.f32 %v203_v44, %v163_v47 }
  0x26   :  { %220 = vst [vmem:[%s593_s2 + $0x18] sm:$0xff] %v200_v53  ;;  %v164_v27 = vadd.f32 %v160_v52, %v156_v56 }
  0x27   :  { %v215_v50 = vadd.f32 %v211_v55, %v207_v26 }
  0x28   :  { %v208_v51 = vadd.f32 %v204_v38, %v164_v27 }
  0x29   :  { %288 = vst [vmem:[%s593_s2 + $0x30] sm:$0xff] %v215_v50 }
  0x2a   :  { %v216_v32 = vadd.f32 %v212_v57, %v208_v51 }
  0x2c   :  { %289 = vst [vmem:[%s593_s2 + $0x38] sm:$0xff] %v216_v32 }

// kernel: reverse.0
= control target key start
LH: loop header
LB: loop body
LE: loop exit
PB: predicated region body
PF: predicated region fallthrough
CT: control target
= control target key end

     0   :  { %v104_v3 = vlaneseq  ;;  %v110_v18 = vld [vmem:[#allocation0 + $0x7] ss:$-1 sm:$0xff]  ;;  %v138_v19 = vld [vmem:[#allocation0 + $0x1f] ss:$-1 sm:$0xff]  ;;  %v166_v22 = vld [vmem:[#allocation0 + $0x37] ss:$-1 sm:$0xff]  ;;  %s617_s0 = inlined_call_operand.vmem [shape: f32[2,4,32,15], index: 0, kind: input, shape index: {}]   ;;  %s618_s1 = inlined_call_operand.vmem [shape: f32[2,4,32,15], index: 1, kind: output, shape index: {}]  }
   0x1   :  { %v60_v0 = vld [vmem:[%s617_s0] sm:$0xff]  ;;  %v62_v1 = vld [vmem:[%s617_s0 + $0x8] sm:$0xff]  ;;  %v64_v2 = vld [vmem:[%s617_s0 + $0x10] sm:$0xff]  ;;  %v111_v20 = vrot.slane %v110_v18, 1  ;;  %v139_v21 = vrot.slane %v138_v19, 1  ;;  %v167_v24 = vrot.slane %v166_v22, 1 }
   0x2   :  { %61 = vst [vmem:[#allocation0 + $0x8] sm:$0xff] %v60_v0  ;;  %63 = vst [vmem:[#allocation0 + $0x10] sm:$0xff] %v62_v1  ;;  %v66_v4 = vld [vmem:[%s617_s0 + $0x18] sm:$0xff]  ;;  %v68_v5 = vld [vmem:[%s617_s0 + $0x20] sm:$0xff]  ;;  %v513_v10 = vshrl.u32 %v104_v3, 7 }
   0x3   :  { %65 = vst [vmem:[#allocation0 + $0x20] sm:$0xff] %v64_v2  ;;  %v70_v6 = vld [vmem:[%s617_s0 + $0x28] sm:$0xff]  ;;  %67 = vst [vmem:[#allocation0 + $0x28] sm:$0xff] %v66_v4  ;;  %v72_v7 = vld [vmem:[%s617_s0 + $0x30] sm:$0xff] }
   0x4   :  { %69 = vst [vmem:[#allocation0 + $0x38] sm:$0xff] %v68_v5  ;;  %71 = vst [vmem:[#allocation0 + $0x40] sm:$0xff] %v70_v6  ;;  %v74_v8 = vld [vmem:[%s617_s0 + $0x38] sm:$0xff]  ;;  %v76_v9 = vld [vmem:[%s617_s0 + $0x40] sm:$0xff]  ;;  %vm106_vm0 = vcmp.lt.s32.totalorder %v513_v10, 7 }
   0x5   :  { %73 = vst [vmem:[#allocation0 + $0x50] sm:$0xff] %v72_v7  ;;  %75 = vst [vmem:[#allocation0 + $0x58] sm:$0xff] %v74_v8  ;;  %v78_v11 = vld [vmem:[%s617_s0 + $0x48] sm:$0xff]  ;;  %v80_v12 = vld [vmem:[%s617_s0 + $0x50] sm:$0xff] }
   0x6   :  { %77 = vst [vmem:[#allocation0 + $0x68] sm:$0xff] %v76_v9  ;;  %v82_v13 = vld [vmem:[%s617_s0 + $0x58] sm:$0xff]  ;;  %79 = vst [vmem:[#allocation0 + $0x70] sm:$0xff] %v78_v11  ;;  %v84_v14 = vld [vmem:[%s617_s0 + $0x60] sm:$0xff] }
   0x7   :  { %81 = vst [vmem:[#allocation0 + $0x80] sm:$0xff] %v80_v12  ;;  %83 = vst [vmem:[#allocation0 + $0x88] sm:$0xff] %v82_v13  ;;  %v86_v15 = vld [vmem:[%s617_s0 + $0x68] sm:$0xff]  ;;  %v88_v16 = vld [vmem:[%s617_s0 + $0x70] sm:$0xff] }
   0x8   :  { %85 = vst [vmem:[#allocation0 + $0x98] sm:$0xff] %v84_v14  ;;  %87 = vst [vmem:[#allocation0 + $0xa0] sm:$0xff] %v86_v15  ;;  %v90_v17 = vld [vmem:[%s617_s0 + $0x78] sm:$0xff]  ;;  %v194_v23 = vld [vmem:[#allocation0 + $0x4f] ss:$-1 sm:$0xff] }
   0x9   :  { %89 = vst [vmem:[#allocation0 + $0xb0] sm:$0xff] %v88_v16  ;;  %91 = vst [vmem:[#allocation0 + $0xb8] sm:$0xff] %v90_v17  ;;  %v195_v25 = vrot.slane %v194_v23, 1  ;;  %v222_v26 = vld [vmem:[#allocation0 + $0x67] ss:$-1 sm:$0xff] }
   0xa   :  { %v250_v27 = vld [vmem:[#allocation0 + $0x7f] ss:$-1 sm:$0xff]  ;;  %v97_v28 = vld [vmem:[#allocation0 + $0xf] ss:$-1 sm:$0xff]  ;;  %v102_v29 = vld [vmem:[#allocation0 + $0x17] ss:$-1 sm:$0xff] }
   0xb   :  { %112 = vst [vmem:[#allocation1 + $0x8] sm:$0xff] %v111_v20  ;;  %v115_v30 = vld [vmem:[#allocation0 + $0xf] ss:$-1 sm:$0xff]  ;;  %140 = vst [vmem:[#allocation1 + $0x18] sm:$0xff] %v139_v21  ;;  %v98_v31 = vrot.slane %v97_v28, 1  ;;  %v103_v32 = vrot.slane %v102_v29, 1 }
   0xc   :  { %v116_v33 = vrot.slane %v115_v30, 1  ;;  %v125_v34 = vld [vmem:[#allocation0 + $0x27] ss:$-1 sm:$0xff]  ;;  %168 = vst [vmem:[#allocation1 + $0x28] sm:$0xff] %v167_v24  ;;  %196 = vst [vmem:[#allocation1 + $0x38] sm:$0xff] %v195_v25  ;;  %v223_v35 = vrot.slane %v222_v26, 1 }
   0xd   :  { %v126_v36 = vrot.slane %v125_v34, 1  ;;  %v130_v37 = vld [vmem:[#allocation0 + $0x2f] ss:$-1 sm:$0xff]  ;;  %v143_v38 = vld [vmem:[#allocation0 + $0x27] ss:$-1 sm:$0xff]  ;;  %v251_v39 = vrot.slane %v250_v27, 1 }
   0xe   :  { %99 = vst [vmem:[#allocation1] sm:$0xff] %v98_v31  ;;  %120 = vst.msk [vmem:[#allocation1 + $0x8] sm:$0xff] %vm106_vm0, %v116_v33  ;;  %v131_v40 = vrot.slane %v130_v37, 1  ;;  %v144_v41 = vrot.slane %v143_v38, 1  ;;  %v153_v42 = vld [vmem:[#allocation0 + $0x3f] ss:$-1 sm:$0xff] }
   0xf   :  { %v158_v43 = vld [vmem:[#allocation0 + $0x47] ss:$-1 sm:$0xff]  ;;  %224 = vst [vmem:[#allocation1 + $0x48] sm:$0xff] %v223_v35  ;;  %107 = vst.msk [vmem:[#allocation1] sm:$0xff] %vm106_vm0, %v103_v32  ;;  %v154_v44 = vrot.slane %v153_v42, 1 }
  0x10   :  { %127 = vst [vmem:[#allocation1 + $0x10] sm:$0xff] %v126_v36  ;;  %v159_v45 = vrot.slane %v158_v43, 1  ;;  %v171_v46 = vld [vmem:[#allocation0 + $0x3f] ss:$-1 sm:$0xff]  ;;  %v181_v47 = vld [vmem:[#allocation0 + $0x57] ss:$-1 sm:$0xff] }
  0x11   :  { %252 = vst [vmem:[#allocation1 + $0x58] sm:$0xff] %v251_v39  ;;  %135 = vst.msk [vmem:[#allocation1 + $0x10] sm:$0xff] %vm106_vm0, %v131_v40  ;;  %v172_v48 = vrot.slane %v171_v46, 1  ;;  %v182_v49 = vrot.slane %v181_v47, 1  ;;  %v186_v50 = vld [vmem:[#allocation0 + $0x5f] ss:$-1 sm:$0xff] }
  0x12   :  { %148 = vst.msk [vmem:[#allocation1 + $0x18] sm:$0xff] %vm106_vm0, %v144_v41  ;;  %v199_v51 = vld [vmem:[#allocation0 + $0x57] ss:$-1 sm:$0xff]  ;;  %155 = vst [vmem:[#allocation1 + $0x20] sm:$0xff] %v154_v44  ;;  %v187_v52 = vrot.slane %v186_v50, 1 }
  0x13   :  { %v200_v53 = vrot.slane %v199_v51, 1  ;;  %v209_v54 = vld [vmem:[#allocation0 + $0x6f] ss:$-1 sm:$0xff]  ;;  %v214_v55 = vld [vmem:[#allocation0 + $0x77] ss:$-1 sm:$0xff]  ;;  %163 = vst.msk [vmem:[#allocation1 + $0x20] sm:$0xff] %vm106_vm0, %v159_v45 }
  0x14   :  { %176 = vst.msk [vmem:[#allocation1 + $0x28] sm:$0xff] %vm106_vm0, %v172_v48  ;;  %183 = vst [vmem:[#allocation1 + $0x30] sm:$0xff] %v182_v49  ;;  %v210_v56 = vrot.slane %v209_v54, 1  ;;  %v215_v57 = vrot.slane %v214_v55, 1  ;;  %v227_v58 = vld [vmem:[#allocation0 + $0x6f] ss:$-1 sm:$0xff] }
  0x15   :  { %v237_v59 = vld [vmem:[#allocation0 + $0x87] ss:$-1 sm:$0xff]  ;;  %191 = vst.msk [vmem:[#allocation1 + $0x30] sm:$0xff] %vm106_vm0, %v187_v52  ;;  %204 = vst.msk [vmem:[#allocation1 + $0x38] sm:$0xff] %vm106_vm0, %v200_v53  ;;  %v228_v60 = vrot.slane %v227_v58, 1  ;;  %v376_v20 = vld [vmem:[#allocation1 + $0x8] sm:$0xff] }
  0x16   :  { %v238_v61 = vrot.slane %v237_v59, 1  ;;  %v242_v62 = vld [vmem:[#allocation0 + $0x8f] ss:$-1 sm:$0xff]  ;;  %v255_v63 = vld [vmem:[#allocation0 + $0x87] ss:$-1 sm:$0xff]  ;;  %211 = vst [vmem:[#allocation1 + $0x40] sm:$0xff] %v210_v56 }
  0x17   :  { %v243_v0 = vrot.slane %v242_v62, 1  ;;  %v256_v1 = vrot.slane %v255_v63, 1  ;;  %v265_v2 = vld [vmem:[#allocation0 + $0x9f] ss:$-1 sm:$0xff]  ;;  %v270_v3 = vld [vmem:[#allocation0 + $0xa7] ss:$-1 sm:$0xff] }
  0x18   :  { %219 = vst.msk [vmem:[#allocation1 + $0x40] sm:$0xff] %vm106_vm0, %v215_v57  ;;  %232 = vst.msk [vmem:[#allocation1 + $0x48] sm:$0xff] %vm106_vm0, %v228_v60  ;;  %v266_v4 = vrot.slane %v265_v2, 1  ;;  %v271_v5 = vrot.slane %v270_v3, 1  ;;  %v278_v6 = vld [vmem:[#allocation0 + $0x97] ss:$-1 sm:$0xff] }
  0x19   :  { %239 = vst [vmem:[#allocation1 + $0x50] sm:$0xff] %v238_v61  ;;  %v283_v7 = vld [vmem:[#allocation0 + $0x9f] ss:$-1 sm:$0xff]  ;;  %260 = vst.msk [vmem:[#allocation1 + $0x58] sm:$0xff] %vm106_vm0, %v256_v1  ;;  %v279_v8 = vrot.slane %v278_v6, 1  ;;  %v374_v19 = vld [vmem:[#allocation1] sm:$0xff] }
  0x1a   :  { %247 = vst.msk [vmem:[#allocation1 + $0x50] sm:$0xff] %vm106_vm0, %v243_v0  ;;  %v284_v9 = vrot.slane %v283_v7, 1  ;;  %v293_v11 = vld [vmem:[#allocation0 + $0xb7] ss:$-1 sm:$0xff]  ;;  %v298_v12 = vld [vmem:[#allocation0 + $0xbf] ss:$-1 sm:$0xff]  ;;  %375 = vst [vmem:[%s618_s1] sm:$0xff] %v374_v19 }
  0x1b   :  { %267 = vst [vmem:[#allocation1 + $0x60] sm:$0xff] %v266_v4  ;;  %v294_v13 = vrot.slane %v293_v11, 1  ;;  %v299_v14 = vrot.slane %v298_v12, 1  ;;  %v306_v15 = vld [vmem:[#allocation0 + $0xaf] ss:$-1 sm:$0xff]  ;;  %280 = vst [vmem:[#allocation1 + $0x68] sm:$0xff] %v279_v8 }
  0x1c   :  { %v311_v16 = vld [vmem:[#allocation0 + $0xb7] ss:$-1 sm:$0xff]  ;;  %275 = vst.msk [vmem:[#allocation1 + $0x60] sm:$0xff] %vm106_vm0, %v271_v5  ;;  %v307_v17 = vrot.slane %v306_v15, 1  ;;  %288 = vst.msk [vmem:[#allocation1 + $0x68] sm:$0xff] %vm106_vm0, %v284_v9  ;;  %v380_v22 = vld [vmem:[#allocation1 + $0x18] sm:$0xff] }
  0x1d   :  { %v312_v18 = vrot.slane %v311_v16, 1  ;;  %v378_v21 = vld [vmem:[#allocation1 + $0x10] sm:$0xff]  ;;  %295 = vst [vmem:[#allocation1 + $0x70] sm:$0xff] %v294_v13  ;;  %377 = vst [vmem:[%s618_s1 + $0x8] sm:$0xff] %v376_v20  ;;  %v382_v23 = vld [vmem:[#allocation1 + $0x20] sm:$0xff] }
  0x1e   :  { %379 = vst [vmem:[%s618_s1 + $0x10] sm:$0xff] %v378_v21  ;;  %v384_v24 = vld [vmem:[#allocation1 + $0x28] sm:$0xff]  ;;  %303 = vst.msk [vmem:[#allocation1 + $0x70] sm:$0xff] %vm106_vm0, %v299_v14  ;;  %v386_v25 = vld [vmem:[#allocation1 + $0x30] sm:$0xff] }
  0x1f   :  { %308 = vst [vmem:[#allocation1 + $0x78] sm:$0xff] %v307_v17  ;;  %381 = vst [vmem:[%s618_s1 + $0x18] sm:$0xff] %v380_v22  ;;  %v388_v26 = vld [vmem:[#allocation1 + $0x38] sm:$0xff]  ;;  %v390_v10 = vld [vmem:[#allocation1 + $0x40] sm:$0xff] }
  0x20   :  { %383 = vst [vmem:[%s618_s1 + $0x20] sm:$0xff] %v382_v23  ;;  %385 = vst [vmem:[%s618_s1 + $0x28] sm:$0xff] %v384_v24  ;;  %v392_v27 = vld [vmem:[#allocation1 + $0x48] sm:$0xff]  ;;  %v396_v29 = vld [vmem:[#allocation1 + $0x58] sm:$0xff] }
  0x21   :  { %316 = vst.msk [vmem:[#allocation1 + $0x78] sm:$0xff] %vm106_vm0, %v312_v18  ;;  %387 = vst [vmem:[%s618_s1 + $0x30] sm:$0xff] %v386_v25  ;;  %v394_v28 = vld [vmem:[#allocation1 + $0x50] sm:$0xff] }
  0x22   :  { %389 = vst [vmem:[%s618_s1 + $0x38] sm:$0xff] %v388_v26  ;;  %391 = vst [vmem:[%s618_s1 + $0x40] sm:$0xff] %v390_v10 }
  0x23   :  { %393 = vst [vmem:[%s618_s1 + $0x48] sm:$0xff] %v392_v27  ;;  %395 = vst [vmem:[%s618_s1 + $0x50] sm:$0xff] %v394_v28  ;;  %v398_v30 = vld [vmem:[#allocation1 + $0x60] sm:$0xff]  ;;  %v400_v31 = vld [vmem:[#allocation1 + $0x68] sm:$0xff] }
  0x24   :  { %397 = vst [vmem:[%s618_s1 + $0x58] sm:$0xff] %v396_v29  ;;  %399 = vst [vmem:[%s618_s1 + $0x60] sm:$0xff] %v398_v30 }
  0x25   :  { %401 = vst [vmem:[%s618_s1 + $0x68] sm:$0xff] %v400_v31  ;;  %v402_v32 = vld [vmem:[#allocation1 + $0x70] sm:$0xff] }
  0x26   :  { %403 = vst [vmem:[%s618_s1 + $0x70] sm:$0xff] %v402_v32 }
  0x28   :  { %v404_v33 = vld [vmem:[#allocation1 + $0x78] sm:$0xff] }
  0x29   :  { %405 = vst [vmem:[%s618_s1 + $0x78] sm:$0xff] %v404_v33 }

</bundles_post_ra>
